<compile_context>
chip_gen: v7x
topology: tpu7x:2x2x1
jax: 0.10.0
libtpu: 0.0.40
codegen_flags: <defaults>
</compile_context>

<pallas_src>
import jax
import jax.numpy as jnp
from jax.experimental import pallas as pl
from jax.experimental.pallas import tpu as pltpu


def mlp_kernel(x_ref, w1_ref, b1_ref, w2_ref, b2_ref, o_ref):
    """Fused fc1 -> GELU -> fc2 over one (b_blk, C, tile_l) block."""
    w1 = w1_ref[...]          # (hidden, C)
    b1 = b1_ref[...]          # (hidden, 1) -- broadcasts over the spatial lane axis
    w2 = w2_ref[...]          # (out_c, hidden)
    b2 = b2_ref[...]          # (out_c, 1)

    # Static unroll over the (small, compile-time) batch block: each image is an
    # independent channel-mixing matmul, so plain 2-D dots keep the MXU lowering
    # simple and the spatial axis lane-dense.
    for b in range(x_ref.shape[0]):
        x = x_ref[b]                                            # (C, tile_l)

        # fc1 (1x1 conv == channel mixing), f32 accumulation on the MXU.
        # TODO(synk): b1 could be folded into the contraction (ones row in x) to
        # shave hidden VPU adds/pixel; skipped to avoid an extra VMEM copy.
        h = jnp.dot(w1, x, preferred_element_type=jnp.float32) + b1

        # act_layer: GELU, computed in the I/O dtype (bf16 polynomial on bf16
        # inputs halves the VALU work that binds on v6e/v7x).
        # TODO(synk): PyTorch nn.GELU() defaults to the exact erf form; the tanh
        # approximation (|diff| ~1e-3) is used for guaranteed Mosaic lowering.
        h = jax.nn.gelu(h.astype(w2.dtype), approximate=True)   # (hidden, tile_l)

        # nn.Dropout(p=0.0) -> identity (both dropout layers).

        # fc2, f32 accumulation.
        o = jnp.dot(w2, h, preferred_element_type=jnp.float32) + b2

        o_ref[b] = o.astype(o_ref.dtype)


def _derive_vmem_limit(default_bytes=48 * 1024 * 1024):
    """Per-generation VMEM budget: physical minus headroom, capped for v5e/v6e."""
    try:
        phys = int(getattr(pltpu.get_tpu_info(), "vmem_capacity_bytes"))
        return int(min(max(phys - 16 * 1024 * 1024, 32 * 1024 * 1024),
                       100 * 1024 * 1024))
    except Exception:
        # Safe everywhere (v7x physical VMEM is 64 MiB per TensorCore).
        return default_bytes


def _choose_tiling(N, C, out_c, hidden, L, itemsize, vmem_limit_bytes):
    """Pick (batch_block, spatial_tile) from the real per-step VMEM footprint."""
    budget = int(0.70 * vmem_limit_bytes)
    weight_bytes = 2 * itemsize * (hidden * C + hidden + out_c * hidden + out_c)
    # Per (image, spatial column): double-buffered in/out blocks + f32 hidden
    # intermediate (+ activation / cast temporaries).
    per_col = 2 * itemsize * (C + out_c) + 4 * 4 * hidden + 2 * itemsize * hidden
    max_cols = max(128, (budget - weight_bytes) // per_col)
    max_cols = min(max_cols, 65536)            # keep per-step time bounded

    if L <= max_cols:
        # Whole spatial extent in one tile; amortize per-step overhead by
        # blocking several images per grid step when H*W is small.
        tile_l = L
        b_blk = max(1, min(N, 8, max_cols // max(L, 1)))
        if b_blk >= N and N >= 2:
            b_blk = max(1, N // 2)             # keep >=2 grid steps (v7x: 2 TCs)
    else:
        tile_l = max(128, (max_cols // 128) * 128)
        b_blk = 1

    # N == 1 with a single spatial tile would collapse the grid to one step and
    # idle one v7x TensorCore -> split the spatial axis in two.
    if N == 1 and b_blk == 1 and tile_l == L and L >= 256:
        tile_l = pl.cdiv(pl.cdiv(L, 2), 128) * 128
    return b_blk, tile_l


def mlp_pallas(x_nchw, w1, b1, w2, b2, *, vmem_limit_bytes=None):
    """Fused 1x1-conv MLP (fc1 -> GELU -> drop -> fc2 -> drop) on NCHW input.

    x_nchw: (N, C_in, H, W)
    w1: (hidden, C_in)   -- fc1.weight squeezed from (hidden, C_in, 1, 1)
    b1: (hidden, 1)
    w2: (C_out, hidden)  -- fc2.weight squeezed
    b2: (C_out, 1)
    returns (N, C_out, H, W)
    """
    N, C, H, W = x_nchw.shape
    hidden = w1.shape[0]
    out_c = w2.shape[0]
    L = H * W
    itemsize = jnp.dtype(x_nchw.dtype).itemsize

    if vmem_limit_bytes is None:
        vmem_limit_bytes = _derive_vmem_limit()

    b_blk, tile_l = _choose_tiling(N, C, out_c, hidden, L, itemsize,
                                   vmem_limit_bytes)

    # NCHW -> (N, C, L): free reshape; channels stay on the sublane axis and the
    # spatial extent lands on the lane axis (lane-dense DMA and stores).
    x3d = x_nchw.reshape(N, C, L)

    # No padding and no trailing slice: ragged batch / spatial tails use Pallas'
    # partial trailing blocks (out-of-bounds stores are dropped), avoiding the
    # extra HBM read+write passes that a pad/slice pair would cost.
    grid = (pl.cdiv(N, b_blk), pl.cdiv(L, tile_l))

    out3d = pl.pallas_call(
        mlp_kernel,
        out_shape=jax.ShapeDtypeStruct((N, out_c, L), x_nchw.dtype),
        grid_spec=pltpu.PrefetchScalarGridSpec(
            num_scalar_prefetch=0,
            grid=grid,
            in_specs=[
                pl.BlockSpec((b_blk, C, tile_l), lambda n, j: (n, 0, j)),
                # Weights / biases: constant index maps -> fetched once, resident.
                pl.BlockSpec((hidden, C), lambda n, j: (0, 0)),
                pl.BlockSpec((hidden, 1), lambda n, j: (0, 0)),
                pl.BlockSpec((out_c, hidden), lambda n, j: (0, 0)),
                pl.BlockSpec((out_c, 1), lambda n, j: (0, 0)),
            ],
            out_specs=pl.BlockSpec((b_blk, out_c, tile_l),
                                   lambda n, j: (n, 0, j)),
        ),
        compiler_params=pltpu.CompilerParams(
            # Both grid axes independent -> shardable across v7x's 2 TensorCores.
            dimension_semantics=("parallel", "parallel"),
            vmem_limit_bytes=vmem_limit_bytes,
        ),
    )(x3d, w1, b1, w2, b2)

    return out3d.reshape(N, out_c, H, W)


def mlp_reference(x_nchw, w1, b1, w2, b2):
    """Pure-JAX reference (same math as the kernel, no Pallas)."""
    N, C, H, W = x_nchw.shape
    f32 = jnp.float32
    x = x_nchw.reshape(N, C, H * W).astype(f32)
    h = jnp.einsum("hc,ncl->nhl", w1.astype(f32), x,
                   precision="highest") + b1.astype(f32)[None]
    h = jax.nn.gelu(h.astype(w2.dtype), approximate=True)   # act dtype mirrors kernel
    o = jnp.einsum("oh,nhl->nol", w2.astype(f32), h.astype(f32),
                   precision="highest") + b2.astype(f32)[None]
    return o.reshape(N, w2.shape[0], H, W)


if __name__ == "__main__":
    # Module config: in_features=4, hidden_features=16, out_features=4
    N, C_in, H, W = 2, 4, 16, 16
    hidden, C_out = 16, 4

    key = jax.random.PRNGKey(0)
    kx, k1, kb1, k2, kb2 = jax.random.split(key, 5)

    x = jax.random.normal(kx, (N, C_in, H, W), dtype=jnp.float32)

    # PyTorch fc1.weight has shape (hidden, C_in, 1, 1); we store the squeezed
    # (hidden, C_in).  Biases stored as columns (hidden, 1) / (C_out, 1) so they
    # broadcast over the spatial lane axis inside the kernel.
    bound1 = 1.0 / (C_in ** 0.5)
    w1 = jax.random.uniform(k1, (hidden, C_in), jnp.float32, -bound1, bound1)
    b1 = jax.random.uniform(kb1, (hidden, 1), jnp.float32, -bound1, bound1)
    bound2 = 1.0 / (hidden ** 0.5)
    w2 = jax.random.uniform(k2, (C_out, hidden), jnp.float32, -bound2, bound2)
    b2 = jax.random.uniform(kb2, (C_out, 1), jnp.float32, -bound2, bound2)

    # --- f32 (matches the PyTorch module's default dtype) ---
    out = mlp_pallas(x, w1, b1, w2, b2)
    jax.block_until_ready(out)
    assert out.shape == (N, C_out, H, W)
    ref = mlp_reference(x, w1, b1, w2, b2)
    err = float(jnp.max(jnp.abs(out - ref)))
    assert jnp.allclose(out, ref, atol=1e-4, rtol=1e-4), err

    # --- bf16 activations/params: halves HBM traffic (the big lever on v5e) and
    # runs the GELU polynomial in bf16 (the big lever on v6e/v7x, where the VALU
    # slot binds).  MXU still accumulates in f32. ---
    to_bf16 = lambda a: a.astype(jnp.bfloat16)
    out_bf16 = mlp_pallas(to_bf16(x), to_bf16(w1), to_bf16(b1),
                          to_bf16(w2), to_bf16(b2))
    jax.block_until_ready(out_bf16)
    ref_bf16 = mlp_reference(to_bf16(x), to_bf16(w1), to_bf16(b1),
                             to_bf16(w2), to_bf16(b2))
    err_bf16 = float(jnp.max(jnp.abs(out_bf16.astype(jnp.float32) - ref_bf16)))
    assert jnp.allclose(out_bf16.astype(jnp.float32), ref_bf16,
                        atol=2e-2, rtol=2e-2), err_bf16

    print("KERNEL_OK")
</pallas_src>

<mosaic_0001>
module attributes {stable_mosaic.version = 11 : i64} {
  func.func @mlp_kernel(%arg0: i32, %arg1: i32, %arg2: memref<1x4x256xf32, #tpu.memory_space<vmem>>, %arg3: memref<16x4xf32, #tpu.memory_space<vmem>>, %arg4: memref<16x1xf32, #tpu.memory_space<vmem>>, %arg5: memref<4x16xf32, #tpu.memory_space<vmem>>, %arg6: memref<4x1xf32, #tpu.memory_space<vmem>>, %arg7: memref<1x4x256xf32, #tpu.memory_space<vmem>>) attributes {dimension_semantics = [#tpu.dimension_semantics<parallel>, #tpu.dimension_semantics<parallel>], iteration_bounds = array<i64: 2, 1>, scalar_prefetch = 0 : i64, scratch_operands = 0 : i64, tpu.core_type = #tpu.core_type<tc>, window_params = [{transform_indices = @transform_0, window_bounds = array<i64: 1, 4, 256>}, {pipeline_mode = #tpu.pipeline_mode<synchronous>, transform_indices = @transform_1, window_bounds = array<i64: 16, 4>}, {pipeline_mode = #tpu.pipeline_mode<synchronous>, transform_indices = @transform_2, window_bounds = array<i64: 16, 1>}, {pipeline_mode = #tpu.pipeline_mode<synchronous>, transform_indices = @transform_3, window_bounds = array<i64: 4, 16>}, {pipeline_mode = #tpu.pipeline_mode<synchronous>, transform_indices = @transform_4, window_bounds = array<i64: 4, 1>}, {transform_indices = @transform_5, window_bounds = array<i64: 1, 4, 256>}]} {
    %c0 = arith.constant 0 : index
    %c0_0 = arith.constant 0 : index
    %0 = vector.load %arg3[%c0, %c0_0] : memref<16x4xf32, #tpu.memory_space<vmem>>, vector<16x4xf32>
    %c0_1 = arith.constant 0 : index
    %c0_2 = arith.constant 0 : index
    %1 = vector.load %arg4[%c0_1, %c0_2] : memref<16x1xf32, #tpu.memory_space<vmem>>, vector<16x1xf32>
    %c0_3 = arith.constant 0 : index
    %c0_4 = arith.constant 0 : index
    %2 = vector.load %arg5[%c0_3, %c0_4] : memref<4x16xf32, #tpu.memory_space<vmem>>, vector<4x16xf32>
    %c0_5 = arith.constant 0 : index
    %c0_6 = arith.constant 0 : index
    %3 = vector.load %arg6[%c0_5, %c0_6] : memref<4x1xf32, #tpu.memory_space<vmem>>, vector<4x1xf32>
    %c0_7 = arith.constant 0 : index
    %c0_8 = arith.constant 0 : index
    %c0_9 = arith.constant 0 : index
    %4 = vector.load %arg2[%c0_7, %c0_8, %c0_9] : memref<1x4x256xf32, #tpu.memory_space<vmem>>, vector<1x4x256xf32>
    %5 = vector.shape_cast %4 : vector<1x4x256xf32> to vector<4x256xf32>
    %cst = arith.constant dense<0.000000e+00> : vector<16x256xf32>
    %6 = tpu.matmul %0, %5, %cst {dimension_numbers = #tpu.dot_dimension_numbers<[1], [0], [0], [1], [0, 0, 1, 1], [], []>} : vector<16x4xf32>, vector<4x256xf32>, vector<16x256xf32> -> vector<16x256xf32>
    %7 = vector.broadcast %1 : vector<16x1xf32> to vector<16x256xf32>
    %8 = arith.addf %6, %7 : vector<16x256xf32>
    %9 = arith.mulf %8, %8 : vector<16x256xf32>
    %10 = arith.mulf %8, %9 : vector<16x256xf32>
    %cst_10 = arith.constant 4.471500e-02 : f32
    %11 = vector.broadcast %cst_10 : f32 to vector<16x256xf32>
    %12 = arith.mulf %11, %10 : vector<16x256xf32>
    %13 = arith.addf %8, %12 : vector<16x256xf32>
    %cst_11 = arith.constant 0.797884583 : f32
    %14 = vector.broadcast %cst_11 : f32 to vector<16x256xf32>
    %15 = arith.mulf %14, %13 : vector<16x256xf32>
    %16 = math.tanh %15 : vector<16x256xf32>
    %cst_12 = arith.constant 1.000000e+00 : f32
    %17 = vector.broadcast %cst_12 : f32 to vector<16x256xf32>
    %18 = arith.addf %17, %16 : vector<16x256xf32>
    %cst_13 = arith.constant 5.000000e-01 : f32
    %19 = vector.broadcast %cst_13 : f32 to vector<16x256xf32>
    %20 = arith.mulf %19, %18 : vector<16x256xf32>
    %21 = arith.mulf %8, %20 : vector<16x256xf32>
    %cst_14 = arith.constant dense<0.000000e+00> : vector<4x256xf32>
    %22 = tpu.matmul %2, %21, %cst_14 {dimension_numbers = #tpu.dot_dimension_numbers<[1], [0], [0], [1], [0, 0, 1, 1], [], []>} : vector<4x16xf32>, vector<16x256xf32>, vector<4x256xf32> -> vector<4x256xf32>
    %23 = vector.broadcast %3 : vector<4x1xf32> to vector<4x256xf32>
    %24 = arith.addf %22, %23 : vector<4x256xf32>
    %c0_15 = arith.constant 0 : index
    %c0_16 = arith.constant 0 : index
    %c0_17 = arith.constant 0 : index
    %25 = vector.load %arg7[%c0_15, %c0_16, %c0_17] : memref<1x4x256xf32, #tpu.memory_space<vmem>>, vector<1x4x256xf32>
    %26 = vector.shape_cast %25 : vector<1x4x256xf32> to vector<4x256xf32>
    %27 = vector.shape_cast %24 : vector<4x256xf32> to vector<1x4x256xf32>
    tpu.vector_store %arg7[%c0_15, %c0_16, %c0_17], %27 {strides = array<i32>} : memref<1x4x256xf32, #tpu.memory_space<vmem>>, vector<1x4x256xf32>,
    return
  }
  func.func @transform_0(%arg0: i32, %arg1: i32) -> (i32, i32, i32) {
    %c0_i32 = arith.constant 0 : i32
    %c0_i32_0 = arith.constant 0 : i32
    return %arg0, %c0_i32, %arg1 : i32, i32, i32
  }
  func.func @transform_1(%arg0: i32, %arg1: i32) -> (i32, i32) {
    %c0_i32 = arith.constant 0 : i32
    %c0_i32_0 = arith.constant 0 : i32
    %c0_i32_1 = arith.constant 0 : i32
    return %c0_i32, %c0_i32_0 : i32, i32
  }
  func.func @transform_2(%arg0: i32, %arg1: i32) -> (i32, i32) {
    %c0_i32 = arith.constant 0 : i32
    %c0_i32_0 = arith.constant 0 : i32
    %c0_i32_1 = arith.constant 0 : i32
    return %c0_i32, %c0_i32_0 : i32, i32
  }
  func.func @transform_3(%arg0: i32, %arg1: i32) -> (i32, i32) {
    %c0_i32 = arith.constant 0 : i32
    %c0_i32_0 = arith.constant 0 : i32
    %c0_i32_1 = arith.constant 0 : i32
    return %c0_i32, %c0_i32_0 : i32, i32
  }
  func.func @transform_4(%arg0: i32, %arg1: i32) -> (i32, i32) {
    %c0_i32 = arith.constant 0 : i32
    %c0_i32_0 = arith.constant 0 : i32
    %c0_i32_1 = arith.constant 0 : i32
    return %c0_i32, %c0_i32_0 : i32, i32
  }
  func.func @transform_5(%arg0: i32, %arg1: i32) -> (i32, i32, i32) {
    %c0_i32 = arith.constant 0 : i32
    %c0_i32_0 = arith.constant 0 : i32
    return %arg0, %c0_i32, %arg1 : i32, i32, i32
  }
}

</mosaic_0001>

<bundles_post_ra>
// kernel: tpu_custom_call.1
= control target key start
LH: loop header
LB: loop body
LE: loop exit
PB: predicated region body
PF: predicated region fallthrough
CT: control target
= control target key end

     0   :  { %10 = vsyncpa [#allocation3], 0  ;;  %s911_s0 = inlined_call_operand.vmem [shape: f32[2,4,256], index: 0, kind: input, shape index: {}]   ;;  %s912_s1 = inlined_call_operand.vmem [shape: f32[16,4], index: 1, kind: input, shape index: {}]   ;;  %s913_s2 = inlined_call_operand.vmem [shape: f32[16,1], index: 2, kind: input, shape index: {}]   ;;  %s914_s3 = inlined_call_operand.vmem [shape: f32[4,16], index: 3, kind: input, shape index: {}]   ;;  %s915_s4 = inlined_call_operand.vmem [shape: f32[4,1], index: 4, kind: input, shape index: {}]   ;;  %s916_s5 = inlined_call_operand.hbm [shape: f32[2,4,256], index: 5, kind: output, shape index: {}]  }
   0x1   :  { %12 = vsyncpa [#allocation3 + $0x1], 0  ;;  %s781_s18 = smov 0   ;;  %s783_s19 = smov 0  }
   0x2   :  { %s785_s20 = smov 0   ;;  %s787_s21 = smov 0  }
   0x3   :  { %s789_s22 = smov 0   ;;  %s791_s23 = smov 0  }
   0x4 LB: > { %s576_s24 = sadd.s32 4294967295, %s746_s23   ;;  %s577_s25 = sadd.s32 4294967294, %s746_s23   ;;  %s746_s23 = sphi %s791_s23, %s18_s23   ;;  %s742_s22 = sphi %s789_s22, %s923_s22   ;;  %s738_s21 = sphi %s787_s21, %s922_s21   ;;  %s734_s20 = sphi %s785_s20, %s921_s20   ;;  %s730_s19 = sphi %s783_s19, %s920_s19   ;;  %s726_s18 = sphi %s781_s18, %s919_s18  }
   0x5   : > { %s30_s26 = sadd.s32 1, %s742_s22  ;;  %s151_s27 = sadd.s32 1, %s734_s20 }
   0x6   : > { %p32_p0 = scmp.ge.s32.totalorder %s30_s26, 2  ;;  %p161_p1 = scmp.ne.s32.totalorder %s734_s20, %s730_s19 }
   0x7   : > { %p162_p2 = scmp.eq.s32.totalorder %s576_s24, 1  ;;  %p167_p3 = scmp.ne.s32.totalorder %s730_s19, %s726_s18 }
   0x8   : > { %s925_s26 = smov (%p32_p0, %s30_s26), 0  ;;  %p168_p5 = scmp.eq.s32.totalorder %s577_s25, 1 }
   0x9   : > { %p821_p4 = por %p162_p2, %p161_p1  ;;  %s146_s29 = ssub.s32 %s742_s22, %s925_s26 }
   0xa   : > { %p580_p6 = scmp.ge.s32.totalorder %s746_s23, 1  ;;  %p149_p7 = scmp.eq.s32.totalorder %s146_s29, 0 }
   0xb   : > { %p828_p8 = por %p168_p5, %p167_p3  ;;  %p211_p9 = scmp.lt.s32.totalorder %s746_s23, 3 }
   0xc   : > { %s834_s6 = scalar_select %p149_p7, %s734_s20, %s151_s27  }
   0xd   : > { %p212_p10 = pnand %p580_p6, %p211_p9 }
   0xe   : > { %p244_p11 = scmp.lt.s32.totalorder (!%p212_p10), %s738_s21, 1  ;;  %v748_v0 = vmov (!%p212_p10), 0.0   ;;  %v256_v1 = vld [vmem:[%s913_s2] sm:$0xff] (!%p212_p10)  ;;  %v749_v2 = vmov (!%p212_p10), 0   ;;  %v257_v3 = vld [vmem:[%s913_s2 + $0x8] sm:$0xff] (!%p212_p10)  ;;  %vm280_vm0 = vcmask (!%p212_p10), 1043456  }
   0xf   : > { %215 = sbr.rel (%p212_p10) target bundleno = 514 (0x202), region = 40  ;;  %349 = vmatprep.mubr.f32.mxu0 (!%p212_p10), %v748_v0  ;;  %471 = vmatprep.mubr.f32.mxu1 (!%p212_p10), %v748_v0  ;;  %v254_v6 = vld [vmem:[%s912_s1] sm:$0xff] (!%p212_p10)  ;;  %vm273_vm1 = vcmask (!%p212_p10), 31744   ;;  %v255_v7 = vld [vmem:[%s912_s1 + $0x8] sm:$0xff] (!%p212_p10)  ;;  %vm403_vm2 = vcmask (!%p212_p10), 130048   ;;  %s595_s11 = sshll.u32 (!%p212_p10), %s738_s21, 7 }
  0x10   : > { %657 = vset.pattern.permute.xlu0 (!%p212_p10), %v749_v2  ;;  %658 = vset.pattern.permute.xlu1 (!%p212_p10), %v749_v2  ;;  %v259_v8 = vld [vmem:[%s915_s4] sm:$0xf] (!%p212_p10)  ;;  %s864_s16 = scalar_lea.hbm (!%p212_p10), %s916_s5, %s595_s11 }
  0x11   : > { %263 = vperm.xlu0 (!%p212_p10), %657, %v256_v1   ;;  %400 = vperm.xlu1 (!%p212_p10), %658, %v259_v8   ;;  %v258_v57 = vld [vmem:[%s914_s3] sm:$0xf] (!%p212_p10) }
  0x15   : > { %268 = vperm.xlu0 (!%p212_p10), %657, %v257_v3  }
  0x16   : > { %s245_s9 = scalar_select %p244_p11, %s738_s21, 1 }
  0x17   : > { %s750_s21 = smov [#allocation2]  }
  0x18   : > { %s594_s10 = sshll.u32 %s245_s9, 3  ;;  %s240_s9 = sand.u32 1, %s730_s19  }
  0x19   : > { %s251_s15 = scalar_lea.vmem %s911_s0, %s594_s10  ;;  %s581_s10 = sshll.u32 %s240_s9, 3 }
  0x1a   : > { %v260_v4 = vld [vmem:[%s251_s15] sm:$0xff]  ;;  %s242_s12 = scalar_lea.vmem [#allocation2], %s581_s10  ;;  %s484_s17 = scalar_lea.sflag [#allocation3], %s240_s9 }
  0x1b   : > { %v272_v5 = vcombine.high %v260_v4, %v260_v4  ;;  %s500_s13 = sshll.u32 %s242_s12, 4  ;;  %s672_s25 = sshll.u32 %s750_s21, 4  ;;  %s866_s13 = int_to_ptr.vmem [resolvable:$true] %s500_s13  ;;  %s673_s25 = int_to_ptr.vmem [resolvable:$false] %s672_s25 }
  0x1c   : > { %s668_s24 = scalar_lea.vmem %s866_s13, 128  ;;  %s674_s27 = scalar_lea.vmem %s673_s25, 256 }
  0x1d   : > { %584 = vmatprep.subr.msk.mxu0 %vm280_vm0, %v272_v5  ;;  %p669_p12 = scmp.ne.s32.totalorder %s866_s13, %s668_s24  ;;  %p675_p1 = scmp.lt.s32.totalorder %s866_s13, %s673_s25 }
  0x1e   : > { %585 = vmatpush1.msk.msra.mxu0 %vm280_vm0, %v260_v4  ;;  %p676_p2 = scmp.lt.s32.totalorder %s674_s27, %s668_s24 }
  0x1f   : > { %586 = vmatmul.mubr.msk.f32.vlgmr.msra.gmra.mrb[0].mxu0 %vm273_vm1, %v254_v6  ;;  %p670_p13 = pnand %p669_p12, %p821_p4 }
  0x20   : > { %355 = vmatprep.mubr.f32.mxu0 %v748_v0  ;;  %p677_p3 = por %p676_p2, %p675_p1 }
  0x21   : > { %p671_p0 = pneg %p670_p13 }
  0x23   : > { %587 = vmatmul.mubr.msk.f32.gmra.mrb[2].mxu0 %vm273_vm1, %v255_v7  ;;  %p678_p5 = pnand %p677_p3, %p671_p0 }
  0x90   : > { %v264_v9 = vpop.permute.xlu0 %263  ;;  %v401_v58 = vpop.permute.xlu1 %400 }
  0x94   : > { %v269_v15 = vpop.permute.xlu0 %268 }
  0xf2   : > { %v351_v10 = vpop.f32.mrb[0].mxu0 }
  0xf3   : > { %v352_v11 = vadd.f32 %v351_v10, %v264_v9  ;;  %v353_v12 = vpop.f32.mrb[1].mxu0 }
  0xf4   : > { %v354_v13 = vadd.f32 %v353_v12, %v264_v9 }
  0xf5   : > { %v362_v14 = vmul.f32 %v352_v11, %v352_v11 }
  0xf6   : > { %v363_v16 = vmul.f32 %v354_v13, %v354_v13  ;;  %v357_v17 = vpop.f32.mrb[2].mxu0 }
  0xf7   : > { %v366_v18 = vmul.f32 %v362_v14, %v352_v11  ;;  %v358_v19 = vadd.f32 %v357_v17, %v269_v15  ;;  %v359_v20 = vpop.f32.mrb[3].mxu0 }
  0xf8   : > { %v367_v21 = vmul.f32 %v363_v16, %v354_v13  ;;  %v360_v22 = vadd.f32 %v359_v20, %v269_v15 }
  0xf9   : > { %v370_v23 = vmul.f32 0.044715, %v366_v18  ;;  %v364_v24 = vmul.f32 %v358_v19, %v358_v19 }
  0xfa   : > { %v371_v25 = vmul.f32 0.044715, %v367_v21  ;;  %v365_v26 = vmul.f32 %v360_v22, %v360_v22 }
  0xfb   : > { %v374_v27 = vadd.f32 %v370_v23, %v352_v11  ;;  %v368_v28 = vmul.f32 %v364_v24, %v358_v19 }
  0xfc   : > { %v369_v29 = vmul.f32 %v365_v26, %v360_v22  ;;  %v375_v30 = vadd.f32 %v371_v25, %v354_v13 }
  0xfd   : > { %v378_v31 = vmul.f32 0.7978846, %v374_v27  ;;  %v372_v32 = vmul.f32 0.044715, %v368_v28 }
  0xfe   : > { %v373_v33 = vmul.f32 0.044715, %v369_v29  ;;  %v379_v34 = vmul.f32 0.7978846, %v375_v30 }
  0xff   : > { %v376_v35 = vadd.f32 %v372_v32, %v358_v19  ;;  %660 = vtanh.f32 %v378_v31 }
 0x100   : > { %v377_v36 = vadd.f32 %v373_v33, %v360_v22  ;;  %662 = vtanh.f32 %v379_v34 }
 0x101   : > { %v380_v37 = vmul.f32 0.7978846, %v376_v35 }
 0x102   : > { %v381_v38 = vmul.f32 0.7978846, %v377_v36 }
 0x103   : > { %664 = vtanh.f32 %v380_v37 }
 0x104   : > { %666 = vtanh.f32 %v381_v38 }
 0x109   : > { %v661_v39 = vpop.eup %660 }
 0x10a   : > { %v663_v40 = vpop.eup %662  ;;  %v386_v41 = vadd.f32 1.0, %v661_v39 }
 0x10b   : > { %v387_v42 = vadd.f32 1.0, %v663_v40 }
 0x10c   : > { %v390_v46 = vmul.f32 0.5, %v386_v41 }
 0x10d   : > { %v665_v43 = vpop.eup %664  ;;  %v391_v48 = vmul.f32 0.5, %v387_v42 }
 0x10e   : > { %v667_v44 = vpop.eup %666  ;;  %v388_v45 = vadd.f32 1.0, %v665_v43  ;;  %v394_v51 = vmul.f32 %v390_v46, %v352_v11 }
 0x10f   : > { %v389_v47 = vadd.f32 1.0, %v667_v44  ;;  %v395_v53 = vmul.f32 %v391_v48, %v354_v13 }
 0x110   : > { %v392_v49 = vmul.f32 0.5, %v388_v45 }
 0x111   : > { %v393_v50 = vmul.f32 0.5, %v389_v47 }
 0x112   : > { %v396_v52 = vmul.f32 %v392_v49, %v358_v19 }
 0x113   : > { %v397_v54 = vmul.f32 %v393_v50, %v360_v22 }
 0x114   : > { %v598_v55 = vpack.c.bf16 %v396_v52, %v394_v51 }
 0x115   : > { %v596_v56 = vpack.c.bf16 %v397_v54, %v395_v53 }
 0x117   : > { %597 = vmatprep.subr.bf16.mxu1 %v596_v56 }
 0x118   : > { %599 = vmatpush1.bf16.msra.mxu1 %v598_v55 }
 0x11b   : > { %588 = vmatmul.mubr.msk.f32.vlgmr.msra.gmra.mrb[0].mxu1 %vm403_vm2, %v258_v57 }
 0x1ee   : > { %v473_v59 = vpop.f32.mrb[0].mxu1 }
 0x1ef   : > { %v474_v60 = vadd.f32 %v473_v59, %v401_v58  ;;  %v475_v61 = vpop.f32.mrb[1].mxu1 }
 0x1f0   : > { %v476_v62 = vadd.f32 %v475_v61, %v401_v58 }
 0x1f2   : > { %v480_v63 = vcombine.low %v474_v60, %v476_v62 }
 0x1f4   : > { %482 = vst [vmem:[%s242_s12] sm:$0xff] %v480_v63 }
 0x1f5   : > { %681 = shalt.err (!%p678_p5)
}
 0x1f6   : > { %s682_s29 = scalar_lea.hbm %s864_s16, 128  ;;  %s686_s9 = scalar_lea.hbm %s916_s5, 256 }
 0x1f7   : > { %p683_p6 = scmp.ne.s32.totalorder %s864_s16, %s682_s29  ;;  %p687_p10 = scmp.lt.u32.totalorder %s864_s16, %s916_s5 }
 0x1f8   : > { %p688_p11 = scmp.lt.u32.totalorder %s686_s9, %s682_s29  ;;  %p690_p13 = scmp.lt.u32.totalorder %s682_s29, %s864_s16 }
 0x1f9   : > { %p684_p7 = pnand %p683_p6, %p821_p4 }
 0x1fa   : > { %p689_p12 = por %p688_p11, %p687_p10 }
 0x1fb   : > { %p685_p9 = pneg %p684_p7 }
 0x1fc   : > { %p691_p0 = por %p690_p13, %p689_p12 }
 0x1fe   : > { %p692_p1 = pnand %p691_p0, %p685_p9 }
 0x200   : > { %695 = shalt.err (!%p692_p1)
}
 0x201   : > { %600 = dma.vmem_to_hbm [thread:$0]  (%p821_p4), %s866_s13, 128, %s864_s16, %s484_s17  }
 0x202 PF: > { %p606_p2 = scmp.ge.s32.totalorder %s746_s23, 2  ;;  %s512_s12 = sand.u32 1, %s726_s18  }
 0x203   : > { %s513_s14 = scalar_lea.sflag [#allocation3], %s512_s12 }
 0x204   : > { %p603_p3 = pnand %p606_p2, %p828_p8 }
 0x206   : > { %721 = dma.done.wait (!%p603_p3), %s513_s14, 128  }
 0x207   : > { %723 = vsyncadd (!%p603_p3), %s513_s14, 4294967168  ;;  %s18_s23 = sadd.s32 1, %s746_s23   ;;  %s919_s18 = smov %s730_s19 }
 0x208   : > { %p15_p5 = scmp.ge.s32.totalorder %s18_s23, 4   ;;  %s920_s19 = smov %s734_s20 }
 0x209   : > { %s921_s20 = smov %s834_s6  ;;  %s922_s21 = smov %s742_s22 }
 0x20a   : > { %s923_s22 = smov %s925_s26  ;;  %17 = sbr.rel (!%p15_p5) target bundleno = 4 (0x4), region = 75 }
 0x211   :  { %518 = vsyncpa [#allocation3], 1 }
 0x212   :  { %520 = vsyncpa [#allocation3 + $0x1], 1 }

</bundles_post_ra>
